<compile_context>
chip_gen: v5e
topology: v5e:2x2
jax: 0.10.0
libtpu: 0.0.40
codegen_flags: <defaults>
</compile_context>

<pallas_src>
import jax
import jax.numpy as jnp
from jax.experimental import pallas as pl
from jax.experimental.pallas import tpu as pltpu


def _round_up(a, b):
    return ((a + b - 1) // b) * b


def _ewl_kernel(x_ref, w_ref, b_ref, o_ref):
    # x_ref: (tile_n, tile_s) in x's dtype; w_ref/b_ref: (1, tile_s) in the
    # promoted compute dtype; broadcast over rows happens on the VPU.
    x = x_ref[...].astype(o_ref.dtype)
    o_ref[...] = x * w_ref[...] + b_ref[...]


def _vmem_capacity_bytes():
    """Device VMEM capacity, with a conservative (v7x-safe) fallback."""
    try:
        return int(pltpu.get_tpu_info().vmem_capacity_bytes)
    except Exception:
        return 64 << 20  # assume the smallest (v7x per-TC) if query fails


def _pick_tiles(n, size, x_itemsize, out_itemsize, vmem_cap):
    """Choose (tile_n, tile_s) so double-buffered in+out blocks fit VMEM."""
    # Feature (lane) tiling: keep the block lane-dense. If the whole feature
    # dim is modest, take it whole (legal even if not a multiple of 128);
    # otherwise use a large multiple of 128 so stores stay unmasked.
    max_full_size = 4096
    if size <= max_full_size:
        tile_s = size
    else:
        tile_s = 1024  # multiple of 128; ragged last block handled by cdiv

    # Row tiling: sublane-packing unit (8 rows for f32, 16 for bf16, 32 int8).
    min_itemsize = max(1, min(x_itemsize, out_itemsize))
    pack_rows = 8 * max(1, 4 // min_itemsize)

    # Budget roughly vmem/16 bytes per block: with double-buffered x-in and
    # y-out blocks (4 live block buffers) total stays ~vmem/4, leaving ample
    # headroom on v7x (64 MiB) and v5e/v6e (128 MiB).
    block_budget = max(vmem_cap // 16, 1 << 20)
    bytes_per_row = tile_s * max(x_itemsize, out_itemsize)
    rows = max(pack_rows, block_budget // max(bytes_per_row, 1))
    rows = (rows // pack_rows) * pack_rows
    # Don't make the block (much) bigger than the array itself.
    rows = max(pack_rows, min(rows, _round_up(n, pack_rows)))
    return rows, tile_s


def element_wise_linear(x, weight=None, bias=None):
    """y = x * weight + bias with trailing-dim broadcasting.

    x:      (..., size)   any leading shape
    weight: (size,) or None (treated as ones)
    bias:   (size,) or None (treated as zeros)
    """
    orig_shape = x.shape
    size = orig_shape[-1]
    x2 = x.reshape(-1, size)
    n = x2.shape[0]

    # PyTorch-style dtype promotion (bf16 x with f32 params -> f32 result).
    dts = [x.dtype]
    if weight is not None:
        dts.append(weight.dtype)
    if bias is not None:
        dts.append(bias.dtype)
    out_dtype = jnp.result_type(*dts)

    w2 = (jnp.ones((size,), out_dtype) if weight is None
          else weight.astype(out_dtype)).reshape(1, size)
    b2 = (jnp.zeros((size,), out_dtype) if bias is None
          else bias.astype(out_dtype)).reshape(1, size)

    x_isz = jnp.dtype(x.dtype).itemsize
    o_isz = jnp.dtype(out_dtype).itemsize
    vmem_cap = _vmem_capacity_bytes()
    tile_n, tile_s = _pick_tiles(n, size, x_isz, o_isz, vmem_cap)

    grid = (pl.cdiv(n, tile_n), pl.cdiv(size, tile_s))

    # Explicit scoped-VMEM limit sized to our double-buffered working set.
    x_block = tile_n * tile_s * x_isz
    o_block = tile_n * tile_s * o_isz
    p_block = 2 * tile_s * o_isz
    needed = 2 * (x_block + o_block) + 2 * p_block
    vmem_limit = min(int(needed * 3 // 2) + (4 << 20), int(vmem_cap * 3 // 4))

    out = pl.pallas_call(
        _ewl_kernel,
        out_shape=jax.ShapeDtypeStruct((n, size), out_dtype),
        grid_spec=pltpu.PrefetchScalarGridSpec(
            num_scalar_prefetch=0,
            grid=grid,
            in_specs=[
                pl.BlockSpec((tile_n, tile_s), lambda i, j: (i, j)),  # x tile
                pl.BlockSpec((1, tile_s), lambda i, j: (0, j)),       # weight
                pl.BlockSpec((1, tile_s), lambda i, j: (0, j)),       # bias
            ],
            out_specs=pl.BlockSpec((tile_n, tile_s), lambda i, j: (i, j)),
        ),
        compiler_params=pltpu.CompilerParams(
            dimension_semantics=("parallel", "parallel"),
            vmem_limit_bytes=vmem_limit,
        ),
    )(x2, w2, b2)

    return out.reshape(orig_shape[:-1] + (size,))


if __name__ == "__main__":
    SIZE = 128
    key = jax.random.PRNGKey(0)

    # Deterministic parameter init matching ElementWiseLinear.reset_parameters()
    # (perturbed slightly so the kernel is not a trivial identity check).
    weight = jnp.ones((SIZE,), dtype=jnp.float32) * 1.5
    bias = jnp.zeros((SIZE,), dtype=jnp.float32) + 0.25

    # Case 1: ragged node count (N not a multiple of the tile) -> exercises
    # the cdiv grid / clipped last block.
    N = 300
    k1, k2 = jax.random.split(key)
    x = jax.random.normal(k1, (N, SIZE), dtype=jnp.float32)
    y = jax.block_until_ready(element_wise_linear(x, weight, bias))
    y_ref = x * weight + bias
    assert y.shape == x.shape and y.dtype == y_ref.dtype
    assert jnp.allclose(y, y_ref, atol=1e-6, rtol=1e-6)

    # Case 2: extra leading (batch) dims, flattened inside the wrapper.
    x3 = jax.random.normal(k2, (2, 7, SIZE), dtype=jnp.float32)
    y3 = jax.block_until_ready(element_wise_linear(x3, weight, bias))
    y3_ref = x3 * weight + bias
    assert y3.shape == x3.shape
    assert jnp.allclose(y3, y3_ref, atol=1e-6, rtol=1e-6)

    # TODO(synk): the `inplace=True` branch (x.mul_/x.add_) has no JAX
    # equivalent (arrays are immutable); out-of-place semantics are identical.
    print("KERNEL_OK")
</pallas_src>

<mosaic_0001>
module attributes {stable_mosaic.version = 11 : i64} {
  func.func @_ewl_kernel(%arg0: i32, %arg1: i32, %arg2: memref<304x128xf32, #tpu.memory_space<vmem>>, %arg3: memref<1x128xf32, #tpu.memory_space<vmem>>, %arg4: memref<1x128xf32, #tpu.memory_space<vmem>>, %arg5: memref<304x128xf32, #tpu.memory_space<vmem>>) attributes {dimension_semantics = [#tpu.dimension_semantics<parallel>, #tpu.dimension_semantics<parallel>], iteration_bounds = array<i64: 1, 1>, scalar_prefetch = 0 : i64, scratch_operands = 0 : i64, tpu.core_type = #tpu.core_type<tc>, window_params = [{transform_indices = @transform_0, window_bounds = array<i64: 304, 128>}, {transform_indices = @transform_1, window_bounds = array<i64: 1, 128>}, {transform_indices = @transform_2, window_bounds = array<i64: 1, 128>}, {transform_indices = @transform_3, window_bounds = array<i64: 304, 128>}]} {
    %c0 = arith.constant 0 : index
    %c0_0 = arith.constant 0 : index
    %0 = vector.load %arg2[%c0, %c0_0] : memref<304x128xf32, #tpu.memory_space<vmem>>, vector<304x128xf32>
    %c0_1 = arith.constant 0 : index
    %c0_2 = arith.constant 0 : index
    %1 = vector.load %arg3[%c0_1, %c0_2] : memref<1x128xf32, #tpu.memory_space<vmem>>, vector<1x128xf32>
    %2 = vector.broadcast %1 : vector<1x128xf32> to vector<304x128xf32>
    %3 = arith.mulf %0, %2 : vector<304x128xf32>
    %c0_3 = arith.constant 0 : index
    %c0_4 = arith.constant 0 : index
    %4 = vector.load %arg4[%c0_3, %c0_4] : memref<1x128xf32, #tpu.memory_space<vmem>>, vector<1x128xf32>
    %5 = vector.broadcast %4 : vector<1x128xf32> to vector<304x128xf32>
    %6 = arith.addf %3, %5 : vector<304x128xf32>
    %c0_5 = arith.constant 0 : index
    %c0_6 = arith.constant 0 : index
    %7 = vector.load %arg5[%c0_5, %c0_6] : memref<304x128xf32, #tpu.memory_space<vmem>>, vector<304x128xf32>
    tpu.vector_store %arg5[%c0_5, %c0_6], %6 {strides = array<i32>} : memref<304x128xf32, #tpu.memory_space<vmem>>, vector<304x128xf32>,
    return
  }
  func.func @transform_0(%arg0: i32, %arg1: i32) -> (i32, i32) {
    %c0_i32 = arith.constant 0 : i32
    return %arg0, %arg1 : i32, i32
  }
  func.func @transform_1(%arg0: i32, %arg1: i32) -> (i32, i32) {
    %c0_i32 = arith.constant 0 : i32
    %c0_i32_0 = arith.constant 0 : i32
    return %c0_i32, %arg1 : i32, i32
  }
  func.func @transform_2(%arg0: i32, %arg1: i32) -> (i32, i32) {
    %c0_i32 = arith.constant 0 : i32
    %c0_i32_0 = arith.constant 0 : i32
    return %c0_i32, %arg1 : i32, i32
  }
  func.func @transform_3(%arg0: i32, %arg1: i32) -> (i32, i32) {
    %c0_i32 = arith.constant 0 : i32
    return %arg0, %arg1 : i32, i32
  }
}

</mosaic_0001>

<bundles_post_ra>
// kernel: tpu_custom_call.1
= control target key start
LH: loop header
LB: loop body
LE: loop exit
PB: predicated region body
PF: predicated region fallthrough
CT: control target
= control target key end

     0   :  { %8 = vsyncpa [#allocation3], 0  ;;  %s433_s0 = inlined_call_operand.hbm [shape: f32[300,128], index: 0, kind: input, shape index: {}]   ;;  %s434_s1 = inlined_call_operand.hbm [shape: f32[1,128], index: 1, kind: input, shape index: {}]   ;;  %s435_s2 = inlined_call_operand.vmem [shape: f32[1,128], index: 2, kind: input, shape index: {}]   ;;  %s436_s3 = inlined_call_operand.hbm [shape: f32[300,128], index: 3, kind: output, shape index: {}]  }
   0x1   :  { %9 = vsyncpa [#allocation6], 0 }
   0x2   :  { %10 = vsyncpa [#allocation4], 0  ;;  %s15_s14 = sshll.u32 %s433_s0, 4  ;;  %s310_s15 = smov [#allocation2]   ;;  %s16_s14 = int_to_ptr.hbm [resolvable:$true] %s15_s14 }
   0x3   :  { %s17_s16 = sshll.u32 %s310_s15, 4  ;;  %s29_s19 = sshll.u32 %s434_s1, 4  ;;  %s18_s16 = int_to_ptr.vmem [resolvable:$true] %s17_s16  ;;  %s30_s19 = int_to_ptr.hbm [resolvable:$true] %s29_s19 }
   0x4   :  { %s311_s20 = smov 128   ;;  %s312_s21 = smov 8  }
   0x5   :  { %23 = dma.hbm_to_vmem [thread:$0]  %s16_s14, 4864, %s18_s16, [#allocation3], %s311_s20, %s311_s20, %s312_s21  }
   0x6   :  { %s313_s22 = smov [#allocation5]  }
   0x7   :  { %s31_s23 = sshll.u32 %s313_s22, 4  ;;  %s32_s23 = int_to_ptr.vmem [resolvable:$true] %s31_s23 }
   0x8   :  { %34 = dma.hbm_to_vmem [thread:$0]  %s30_s19, 16, %s32_s23, [#allocation6]  }
   0x9   :  { %304 = dma.done.wait [#allocation3], 4864  }
   0xa   :  { %305 = vsyncadd [#allocation3], 4294962432 }
   0xb   :  { %306 = dma.done.wait [#allocation6], 16  }
   0xc   :  { %307 = vsyncadd [#allocation6], 4294967280  ;;  %v45_v0 = vld [vmem:[#allocation2] sm:$0xff]  ;;  %v344_v1 = vld [vmem:[#allocation5] ss:$0 sm:$0xff]  ;;  %s211_s27 = sshll.u32 %s436_s3, 4  ;;  %s212_s27 = int_to_ptr.hbm [resolvable:$true] %s211_s27 }
   0xd   :  { %v349_v2 = vld [vmem:[%s435_s2] ss:$0 sm:$0xff]  ;;  %v46_v3 = vld [vmem:[#allocation2 + $0x8] sm:$0xff]  ;;  %v87_v4 = vmul.f32 %v344_v1, %v45_v0  ;;  %v47_v6 = vld [vmem:[#allocation2 + $0x10] sm:$0xff]  ;;  %s314_s2 = smov [#allocation7]  }
   0xe   :  { %v88_v5 = vmul.f32 %v344_v1, %v46_v3  ;;  %v48_v7 = vld [vmem:[#allocation2 + $0x18] sm:$0xff]  ;;  %v49_v8 = vld [vmem:[#allocation2 + $0x20] sm:$0xff]  ;;  %v89_v9 = vmul.f32 %v344_v1, %v47_v6  ;;  %v50_v12 = vld [vmem:[#allocation2 + $0x28] sm:$0xff]  ;;  %s209_s24 = sshll.u32 %s314_s2, 4  ;;  %s210_s24 = int_to_ptr.vmem [resolvable:$true] %s209_s24 }
   0xf   :  { %v90_v10 = vmul.f32 %v344_v1, %v48_v7  ;;  %v91_v11 = vmul.f32 %v344_v1, %v49_v8  ;;  %v51_v13 = vld [vmem:[#allocation2 + $0x30] sm:$0xff]  ;;  %v52_v14 = vld [vmem:[#allocation2 + $0x38] sm:$0xff]  ;;  %v129_v15 = vadd.f32 %v349_v2, %v87_v4  ;;  %v92_v17 = vmul.f32 %v344_v1, %v50_v12  ;;  %v53_v19 = vld [vmem:[#allocation2 + $0x40] sm:$0xff] }
  0x10   :  { %v130_v16 = vadd.f32 %v349_v2, %v88_v5  ;;  %v93_v18 = vmul.f32 %v344_v1, %v51_v13  ;;  %v54_v20 = vld [vmem:[#allocation2 + $0x48] sm:$0xff]  ;;  %v131_v21 = vadd.f32 %v349_v2, %v89_v9  ;;  %v94_v23 = vmul.f32 %v344_v1, %v52_v14  ;;  %v55_v24 = vld [vmem:[#allocation2 + $0x50] sm:$0xff]  ;;  %v56_v27 = vld [vmem:[#allocation2 + $0x58] sm:$0xff] }
  0x11   :  { %v132_v22 = vadd.f32 %v349_v2, %v90_v10  ;;  %167 = vst [vmem:[#allocation7] sm:$0xff] %v129_v15  ;;  %v133_v25 = vadd.f32 %v349_v2, %v91_v11  ;;  %v95_v26 = vmul.f32 %v344_v1, %v53_v19  ;;  %v134_v28 = vadd.f32 %v349_v2, %v92_v17  ;;  %v57_v30 = vld [vmem:[#allocation2 + $0x60] sm:$0xff]  ;;  %v58_v33 = vld [vmem:[#allocation2 + $0x68] sm:$0xff]  ;;  %v59_v36 = vld [vmem:[#allocation2 + $0x70] sm:$0xff] }
  0x12   :  { %168 = vst [vmem:[#allocation7 + $0x8] sm:$0xff] %v130_v16  ;;  %v96_v29 = vmul.f32 %v344_v1, %v54_v20  ;;  %v135_v31 = vadd.f32 %v349_v2, %v93_v18  ;;  %v97_v32 = vmul.f32 %v344_v1, %v55_v24  ;;  %v136_v34 = vadd.f32 %v349_v2, %v94_v23  ;;  %v60_v39 = vld [vmem:[#allocation2 + $0x78] sm:$0xff]  ;;  %v61_v42 = vld [vmem:[#allocation2 + $0x80] sm:$0xff]  ;;  %v62_v45 = vld [vmem:[#allocation2 + $0x88] sm:$0xff] }
  0x13   :  { %169 = vst [vmem:[#allocation7 + $0x10] sm:$0xff] %v131_v21  ;;  %v98_v35 = vmul.f32 %v344_v1, %v56_v27  ;;  %v137_v37 = vadd.f32 %v349_v2, %v95_v26  ;;  %v99_v38 = vmul.f32 %v344_v1, %v57_v30  ;;  %v100_v41 = vmul.f32 %v344_v1, %v58_v33  ;;  %v63_v48 = vld [vmem:[#allocation2 + $0x90] sm:$0xff]  ;;  %v64_v51 = vld [vmem:[#allocation2 + $0x98] sm:$0xff]  ;;  %v65_v54 = vld [vmem:[#allocation2 + $0xa0] sm:$0xff] }
  0x14   :  { %170 = vst [vmem:[#allocation7 + $0x18] sm:$0xff] %v132_v22  ;;  %v138_v40 = vadd.f32 %v349_v2, %v96_v29  ;;  %v139_v43 = vadd.f32 %v349_v2, %v97_v32  ;;  %v101_v44 = vmul.f32 %v344_v1, %v59_v36  ;;  %v102_v47 = vmul.f32 %v344_v1, %v60_v39  ;;  %v66_v57 = vld [vmem:[#allocation2 + $0xa8] sm:$0xff]  ;;  %v67_v60 = vld [vmem:[#allocation2 + $0xb0] sm:$0xff]  ;;  %v68_v63 = vld [vmem:[#allocation2 + $0xb8] sm:$0xff] }
  0x15   :  { %171 = vst [vmem:[#allocation7 + $0x20] sm:$0xff] %v133_v25  ;;  %v140_v46 = vadd.f32 %v349_v2, %v98_v35  ;;  %v141_v49 = vadd.f32 %v349_v2, %v99_v38  ;;  %v103_v50 = vmul.f32 %v344_v1, %v61_v42  ;;  %v142_v52 = vadd.f32 %v349_v2, %v100_v41  ;;  %v69_v4 = vld [vmem:[#allocation2 + $0xc0] sm:$0xff]  ;;  %v70_v7 = vld [vmem:[#allocation2 + $0xc8] sm:$0xff]  ;;  %v71_v10 = vld [vmem:[#allocation2 + $0xd0] sm:$0xff] }
  0x16   :  { %172 = vst [vmem:[#allocation7 + $0x28] sm:$0xff] %v134_v28  ;;  %v104_v53 = vmul.f32 %v344_v1, %v62_v45  ;;  %v143_v55 = vadd.f32 %v349_v2, %v101_v44  ;;  %v105_v56 = vmul.f32 %v344_v1, %v63_v48  ;;  %v144_v58 = vadd.f32 %v349_v2, %v102_v47  ;;  %v72_v13 = vld [vmem:[#allocation2 + $0xd8] sm:$0xff]  ;;  %v73_v16 = vld [vmem:[#allocation2 + $0xe0] sm:$0xff]  ;;  %v74_v19 = vld [vmem:[#allocation2 + $0xe8] sm:$0xff] }
  0x17   :  { %173 = vst [vmem:[#allocation7 + $0x30] sm:$0xff] %v135_v31  ;;  %v106_v59 = vmul.f32 %v344_v1, %v64_v51  ;;  %v145_v61 = vadd.f32 %v349_v2, %v103_v50  ;;  %v107_v62 = vmul.f32 %v344_v1, %v65_v54  ;;  %v108_v3 = vmul.f32 %v344_v1, %v66_v57  ;;  %v75_v22 = vld [vmem:[#allocation2 + $0xf0] sm:$0xff]  ;;  %v76_v25 = vld [vmem:[#allocation2 + $0xf8] sm:$0xff]  ;;  %v77_v28 = vld [vmem:[#allocation2 + $0x100] sm:$0xff] }
  0x18   :  { %174 = vst [vmem:[#allocation7 + $0x38] sm:$0xff] %v136_v34  ;;  %v146_v0 = vadd.f32 %v349_v2, %v104_v53  ;;  %v147_v5 = vadd.f32 %v349_v2, %v105_v56  ;;  %v109_v6 = vmul.f32 %v344_v1, %v67_v60  ;;  %v110_v9 = vmul.f32 %v344_v1, %v68_v63  ;;  %v78_v31 = vld [vmem:[#allocation2 + $0x108] sm:$0xff]  ;;  %v79_v34 = vld [vmem:[#allocation2 + $0x110] sm:$0xff] }
  0x19   :  { %175 = vst [vmem:[#allocation7 + $0x40] sm:$0xff] %v137_v37  ;;  %v148_v8 = vadd.f32 %v349_v2, %v106_v59  ;;  %v149_v11 = vadd.f32 %v349_v2, %v107_v62  ;;  %v111_v12 = vmul.f32 %v344_v1, %v69_v4  ;;  %v150_v14 = vadd.f32 %v349_v2, %v108_v3  ;;  %v80_v37 = vld [vmem:[#allocation2 + $0x118] sm:$0xff] }
  0x1a   :  { %176 = vst [vmem:[#allocation7 + $0x48] sm:$0xff] %v138_v40  ;;  %v112_v15 = vmul.f32 %v344_v1, %v70_v7  ;;  %v151_v17 = vadd.f32 %v349_v2, %v109_v6  ;;  %v113_v18 = vmul.f32 %v344_v1, %v71_v10  ;;  %v152_v20 = vadd.f32 %v349_v2, %v110_v9  ;;  %v81_v40 = vld [vmem:[#allocation2 + $0x120] sm:$0xff] }
  0x1b   :  { %177 = vst [vmem:[#allocation7 + $0x50] sm:$0xff] %v139_v43  ;;  %v114_v21 = vmul.f32 %v344_v1, %v72_v13  ;;  %v153_v23 = vadd.f32 %v349_v2, %v111_v12  ;;  %v115_v24 = vmul.f32 %v344_v1, %v73_v16  ;;  %v116_v27 = vmul.f32 %v344_v1, %v74_v19  ;;  %v82_v43 = vld [vmem:[#allocation2 + $0x128] sm:$0xff] }
  0x1c   :  { %178 = vst [vmem:[#allocation7 + $0x58] sm:$0xff] %v140_v46  ;;  %v154_v26 = vadd.f32 %v349_v2, %v112_v15  ;;  %v155_v29 = vadd.f32 %v349_v2, %v113_v18  ;;  %v117_v30 = vmul.f32 %v344_v1, %v75_v22  ;;  %v118_v33 = vmul.f32 %v344_v1, %v76_v25 }
  0x1d   :  { %179 = vst [vmem:[#allocation7 + $0x60] sm:$0xff] %v141_v49  ;;  %v156_v32 = vadd.f32 %v349_v2, %v114_v21  ;;  %v157_v35 = vadd.f32 %v349_v2, %v115_v24  ;;  %v119_v36 = vmul.f32 %v344_v1, %v77_v28  ;;  %v158_v38 = vadd.f32 %v349_v2, %v116_v27 }
  0x1e   :  { %180 = vst [vmem:[#allocation7 + $0x68] sm:$0xff] %v142_v52  ;;  %v120_v39 = vmul.f32 %v344_v1, %v78_v31  ;;  %v159_v41 = vadd.f32 %v349_v2, %v117_v30  ;;  %v121_v42 = vmul.f32 %v344_v1, %v79_v34  ;;  %v160_v44 = vadd.f32 %v349_v2, %v118_v33 }
  0x1f   :  { %181 = vst [vmem:[#allocation7 + $0x70] sm:$0xff] %v143_v55  ;;  %v122_v45 = vmul.f32 %v344_v1, %v80_v37  ;;  %v161_v46 = vadd.f32 %v349_v2, %v119_v36  ;;  %v123_v47 = vmul.f32 %v344_v1, %v81_v40  ;;  %v124_v49 = vmul.f32 %v344_v1, %v82_v43 }
  0x20   :  { %182 = vst [vmem:[#allocation7 + $0x78] sm:$0xff] %v144_v58  ;;  %v162_v48 = vadd.f32 %v349_v2, %v120_v39  ;;  %v163_v50 = vadd.f32 %v349_v2, %v121_v42 }
  0x21   :  { %183 = vst [vmem:[#allocation7 + $0x80] sm:$0xff] %v145_v61  ;;  %v164_v51 = vadd.f32 %v349_v2, %v122_v45  ;;  %v165_v52 = vadd.f32 %v349_v2, %v123_v47  ;;  %v166_v53 = vadd.f32 %v349_v2, %v124_v49 }
  0x22   :  { %184 = vst [vmem:[#allocation7 + $0x88] sm:$0xff] %v146_v0 }
  0x23   :  { %185 = vst [vmem:[#allocation7 + $0x90] sm:$0xff] %v147_v5 }
  0x24   :  { %186 = vst [vmem:[#allocation7 + $0x98] sm:$0xff] %v148_v8 }
  0x25   :  { %187 = vst [vmem:[#allocation7 + $0xa0] sm:$0xff] %v149_v11 }
  0x26   :  { %188 = vst [vmem:[#allocation7 + $0xa8] sm:$0xff] %v150_v14 }
  0x27   :  { %189 = vst [vmem:[#allocation7 + $0xb0] sm:$0xff] %v151_v17 }
  0x28   :  { %190 = vst [vmem:[#allocation7 + $0xb8] sm:$0xff] %v152_v20 }
  0x29   :  { %191 = vst [vmem:[#allocation7 + $0xc0] sm:$0xff] %v153_v23 }
  0x2a   :  { %192 = vst [vmem:[#allocation7 + $0xc8] sm:$0xff] %v154_v26 }
  0x2b   :  { %193 = vst [vmem:[#allocation7 + $0xd0] sm:$0xff] %v155_v29 }
  0x2c   :  { %194 = vst [vmem:[#allocation7 + $0xd8] sm:$0xff] %v156_v32 }
  0x2d   :  { %195 = vst [vmem:[#allocation7 + $0xe0] sm:$0xff] %v157_v35 }
  0x2e   :  { %196 = vst [vmem:[#allocation7 + $0xe8] sm:$0xff] %v158_v38 }
  0x2f   :  { %197 = vst [vmem:[#allocation7 + $0xf0] sm:$0xff] %v159_v41 }
  0x30   :  { %198 = vst [vmem:[#allocation7 + $0xf8] sm:$0xff] %v160_v44 }
  0x31   :  { %199 = vst [vmem:[#allocation7 + $0x100] sm:$0xff] %v161_v46 }
  0x32   :  { %200 = vst [vmem:[#allocation7 + $0x108] sm:$0xff] %v162_v48 }
  0x33   :  { %201 = vst [vmem:[#allocation7 + $0x110] sm:$0xff] %v163_v50 }
  0x34   :  { %202 = vst [vmem:[#allocation7 + $0x118] sm:$0xff] %v164_v51 }
  0x35   :  { %203 = vst [vmem:[#allocation7 + $0x120] sm:$0xff] %v165_v52 }
  0x36   :  { %204 = vst [vmem:[#allocation7 + $0x128] sm:$0xff] %v166_v53 }
  0x37   :  { %217 = dma.vmem_to_hbm [thread:$0]  %s210_s24, 4864, %s212_s27, [#allocation4], %s311_s20, %s311_s20, %s312_s21  }
  0x38   :  { %308 = dma.done.wait [#allocation4], 4864  }
  0x39   :  { %309 = vsyncadd [#allocation4], 4294962432 }
  0x3a   :  { %222 = vsyncpa [#allocation3], 1 }
  0x3b   :  { %223 = vsyncpa [#allocation6], 1 }
  0x3c   :  { %224 = vsyncpa [#allocation4], 1 }

</bundles_post_ra>
